<compile_context>
chip_gen: v6e
topology: v6e:2x2x1
jax: 0.10.0
libtpu: 0.0.40
codegen_flags: <defaults>
</compile_context>

<pallas_src>
import functools
import math

import jax
import jax.numpy as jnp
from jax.experimental import pallas as pl
from jax.experimental.pallas import tpu as pltpu


# ---------------------------------------------------------------------------
# Kernel 1: QKV projection, tiled over (batch, seq rows, 3E output columns).
# The 1/sqrt(head_dim) scale is pre-folded into the Q columns of w/b.
# ---------------------------------------------------------------------------
def _qkv_proj_kernel(x_ref, w_ref, b_ref, o_ref, *, precision):
    # x_ref: (1, TS, E)   w_ref: (E, TN)   b_ref: (1, TN)   o_ref: (1, TS, TN)
    y = jnp.dot(x_ref[0], w_ref[...],
                preferred_element_type=jnp.float32, precision=precision)
    o_ref[0] = (y + b_ref[...]).astype(o_ref.dtype)


# ---------------------------------------------------------------------------
# Kernel 2: flash-style attention (online softmax over kv tiles) with the
# output projection fused in.  Grid = (batch, q-tiles, head-tiles, kv-tiles);
# head-tiles and kv-tiles are reduction axes (output block stays resident).
# ---------------------------------------------------------------------------
def _attention_kernel(q_ref, k_ref, v_ref, wo_ref, bo_ref, o_ref,
                      m_ref, l_ref, acc_ref, oacc_ref, *, precision):
    # q_ref: (1, TH, TQ, Dh)   k_ref/v_ref: (1, TH, TK, Dh)
    # wo_ref: (TH, Dh, E)      bo_ref: (1, E)      o_ref: (1, TQ, E)
    # m_ref/l_ref: (TH, TQ, 1) f32   acc_ref: (TH, TQ, Dh) f32
    # oacc_ref: (TQ, E) f32 output accumulator across head tiles.
    hi = pl.program_id(2)
    ki = pl.program_id(3)
    n_h = pl.num_programs(2)
    n_k = pl.num_programs(3)

    @pl.when(ki == 0)
    def _init_stats():
        m_ref[...] = jnp.full(m_ref.shape, -jnp.inf, dtype=jnp.float32)
        l_ref[...] = jnp.zeros(l_ref.shape, dtype=jnp.float32)
        acc_ref[...] = jnp.zeros(acc_ref.shape, dtype=jnp.float32)

    @pl.when(jnp.logical_and(hi == 0, ki == 0))
    def _init_out_acc():
        oacc_ref[...] = jnp.zeros(oacc_ref.shape, dtype=jnp.float32)

    q = q_ref[0]                                     # (TH, TQ, Dh), pre-scaled
    k = k_ref[0]                                     # (TH, TK, Dh)
    v = v_ref[0]                                     # (TH, TK, Dh)

    # Batched over heads; contraction over Dh handled natively (no k.T).
    s = jnp.einsum('hqd,hkd->hqk', q, k,
                   preferred_element_type=jnp.float32,
                   precision=precision)              # (TH, TQ, TK) f32

    m_prev = m_ref[...]
    m_new = jnp.maximum(m_prev, s.max(axis=-1, keepdims=True))
    alpha = jnp.exp(m_prev - m_new)
    p = jnp.exp(s - m_new)                           # (TH, TQ, TK) f32

    l_ref[...] = alpha * l_ref[...] + p.sum(axis=-1, keepdims=True)
    acc_ref[...] = alpha * acc_ref[...] + jnp.einsum(
        'hqk,hkd->hqd', p.astype(v.dtype), v,
        preferred_element_type=jnp.float32, precision=precision)
    m_ref[...] = m_new

    @pl.when(ki == n_k - 1)
    def _project_heads():
        # Exact normalization (tiny epilogue cost; keeps the f32 path exact).
        attn = acc_ref[...] / l_ref[...]             # (TH, TQ, Dh) f32
        # One contraction over (head, Dh) instead of a per-head unrolled loop.
        oacc_ref[...] += jnp.einsum(
            'hqd,hde->qe', attn.astype(wo_ref.dtype), wo_ref[...],
            preferred_element_type=jnp.float32, precision=precision)

    @pl.when(jnp.logical_and(hi == n_h - 1, ki == n_k - 1))
    def _write_out():
        o_ref[0] = (oacc_ref[...] + bo_ref[...]).astype(o_ref.dtype)


# ---------------------------------------------------------------------------
# Tiling / VMEM helpers
# ---------------------------------------------------------------------------
def _choose_tile(n, target, multiple):
    """Largest divisor of n that is <= target and a multiple of `multiple`;
    falls back to n (full dim, always legal) if none exists."""
    n = int(n)
    if n <= target:
        return n
    t = (target // multiple) * multiple
    while t >= multiple:
        if n % t == 0:
            return t
        t -= multiple
    return n


def _block_bytes(shape, dtype):
    """Conservative VMEM footprint of one block incl. (sublane, lane) padding."""
    shape = tuple(int(d) for d in shape)
    itemsize = jnp.dtype(dtype).itemsize
    if not shape:
        return 8 * 128 * 4
    lane = -(-shape[-1] // 128) * 128
    second = shape[-2] if len(shape) >= 2 else 1
    sub_mult = 8 * max(1, 4 // itemsize)
    second = -(-second // sub_mult) * sub_mult
    lead = 1
    for d in shape[:-2]:
        lead *= d
    return lead * second * lane * itemsize


def _vmem_estimate(pipelined, scratch, temps):
    est = sum(2 * _block_bytes(s, d) for s, d in pipelined)      # double-buffered
    est += sum(_block_bytes(s, d) for s, d in scratch)
    est += sum(_block_bytes(s, d) for s, d in temps)             # in-kernel values
    return int(est * 1.25) + (2 << 20)                           # headroom


def _vmem_budget_bytes():
    """Per-core VMEM budget with 16 MiB headroom (48 MiB v7x, 112 MiB v5e/v6e)."""
    cap = 64 << 20
    try:
        cap = int(pltpu.get_tpu_info().vmem_capacity_bytes)
    except Exception:
        pass
    return max(32 << 20, cap - (16 << 20))


# ---------------------------------------------------------------------------
# Wrapper
# ---------------------------------------------------------------------------
def self_attention_pallas(x, w_qkv, b_qkv, w_out, b_out, *, num_heads,
                          compute_dtype=jnp.bfloat16,
                          q_tile=256, kv_tile=512, head_tile=8,
                          proj_tile=512, proj_n_tile=512):
    """Multi-head self-attention forward matching the PyTorch module.

    x: (B, S, E).  w_qkv: (3E, E), b_qkv: (3E,), w_out: (E, E), b_out: (E,)
    in torch nn.Linear layout.
    """
    B, S, E = x.shape
    if E % num_heads:
        raise ValueError("embed_dim must be divisible by num_heads")
    head_dim = E // num_heads
    scale = 1.0 / math.sqrt(head_dim)
    is_f32 = jnp.dtype(compute_dtype) == jnp.dtype(jnp.float32)
    precision = jax.lax.Precision.HIGHEST if is_f32 else None
    budget = _vmem_budget_bytes()

    # --- parameter prep (layout + dtype plumbing, once per call) ---
    scale_cols = jnp.concatenate(
        [jnp.full((E,), scale, jnp.float32), jnp.ones((2 * E,), jnp.float32)])
    # Fold 1/sqrt(Dh) into the Q columns of the projection weight and bias.
    w_qkv_t = (jnp.asarray(w_qkv, jnp.float32).T * scale_cols[None, :]
               ).astype(compute_dtype)                            # (E, 3E)
    b_qkv_2d = (jnp.asarray(b_qkv, jnp.float32) * scale_cols).reshape(1, 3 * E)
    # Output weight in head-major (H, Dh, E): per-head accumulators contract
    # directly against their weight slice (no concat / relayout in-kernel).
    w_out_h = jnp.asarray(w_out, jnp.float32).T.reshape(
        num_heads, head_dim, E).astype(compute_dtype)
    b_out_2d = jnp.asarray(b_out, jnp.float32).reshape(1, E)
    x_c = x.astype(compute_dtype)

    # --- kernel 1: QKV projection, tiled over rows and 3E output columns ---
    ts = _choose_tile(S, proj_tile, 8)
    tn = _choose_tile(3 * E, proj_n_tile, 128)
    while True:
        pipelined = [((1, ts, E), compute_dtype), ((E, tn), compute_dtype),
                     ((1, tn), jnp.float32), ((1, ts, tn), compute_dtype)]
        temps = [((ts, tn), jnp.float32)]
        est1 = _vmem_estimate(pipelined, [], temps)
        if est1 <= budget:
            break
        new_tn = _choose_tile(3 * E, max(128, tn // 2), 128)
        if new_tn < tn:
            tn = new_tn
            continue
        new_ts = _choose_tile(S, max(8, ts // 2), 8)
        if new_ts < ts:
            ts = new_ts
            continue
        break

    qkv = pl.pallas_call(
        functools.partial(_qkv_proj_kernel, precision=precision),
        out_shape=jax.ShapeDtypeStruct((B, S, 3 * E), compute_dtype),
        grid_spec=pltpu.PrefetchScalarGridSpec(
            num_scalar_prefetch=0,
            grid=(B, S // ts, (3 * E) // tn),
            in_specs=[
                pl.BlockSpec((1, ts, E), lambda b, s, n: (b, s, 0)),
                pl.BlockSpec((E, tn), lambda b, s, n: (0, n)),
                pl.BlockSpec((1, tn), lambda b, s, n: (0, n)),
            ],
            out_specs=pl.BlockSpec((1, ts, tn), lambda b, s, n: (b, s, n)),
        ),
        compiler_params=pltpu.CompilerParams(
            dimension_semantics=("parallel", "parallel", "parallel"),
            vmem_limit_bytes=min(budget, max(32 << 20, est1)),
        ),
    )(x_c, w_qkv_t, b_qkv_2d)

    # --- layout plumbing between kernels (pure XLA transpose, no compute) ---
    # TODO(synk): emit head-major q/k/v directly from kernel 1 when head_dim is
    # a multiple of 128 to save this HBM round trip.
    qkv_h = qkv.reshape(B, S, 3, num_heads, head_dim)
    qkv_h = jnp.transpose(qkv_h, (2, 0, 3, 1, 4))                 # (3, B, H, S, Dh)
    q, k, v = qkv_h[0], qkv_h[1], qkv_h[2]                        # (B, H, S, Dh)

    # --- kernel 2: flash attention + fused output projection ---
    tq = _choose_tile(S, q_tile, 8)
    tk = _choose_tile(S, kv_tile, 8)
    th = _choose_tile(num_heads, head_tile, 1)
    while True:
        pipelined = [((1, th, tq, head_dim), compute_dtype),
                     ((1, th, tk, head_dim), compute_dtype),
                     ((1, th, tk, head_dim), compute_dtype),
                     ((th, head_dim, E), compute_dtype),
                     ((1, E), jnp.float32),
                     ((1, tq, E), x.dtype)]
        scratch = [((th, tq, 1), jnp.float32), ((th, tq, 1), jnp.float32),
                   ((th, tq, head_dim), jnp.float32), ((tq, E), jnp.float32)]
        temps = [((th, tq, tk), jnp.float32), ((th, tq, tk), jnp.float32),
                 ((th, tq, head_dim), jnp.float32), ((tq, E), jnp.float32)]
        est2 = _vmem_estimate(pipelined, scratch, temps)
        if est2 <= budget:
            break
        new_tk = _choose_tile(S, max(8, tk // 2), 8)
        if new_tk < tk:
            tk = new_tk
            continue
        new_th = _choose_tile(num_heads, max(1, th // 2), 1)
        if new_th < th:
            th = new_th
            continue
        new_tq = _choose_tile(S, max(8, tq // 2), 8)
        if new_tq < tq:
            tq = new_tq
            continue
        break

    out = pl.pallas_call(
        functools.partial(_attention_kernel, precision=precision),
        out_shape=jax.ShapeDtypeStruct((B, S, E), x.dtype),
        grid_spec=pltpu.PrefetchScalarGridSpec(
            num_scalar_prefetch=0,
            grid=(B, S // tq, num_heads // th, S // tk),
            in_specs=[
                pl.BlockSpec((1, th, tq, head_dim),
                             lambda b, qi, hi, ki: (b, hi, qi, 0)),
                pl.BlockSpec((1, th, tk, head_dim),
                             lambda b, qi, hi, ki: (b, hi, ki, 0)),
                pl.BlockSpec((1, th, tk, head_dim),
                             lambda b, qi, hi, ki: (b, hi, ki, 0)),
                pl.BlockSpec((th, head_dim, E),
                             lambda b, qi, hi, ki: (hi, 0, 0)),
                pl.BlockSpec((1, E), lambda b, qi, hi, ki: (0, 0)),
            ],
            out_specs=pl.BlockSpec((1, tq, E), lambda b, qi, hi, ki: (b, qi, 0)),
            scratch_shapes=[
                pltpu.VMEM((th, tq, 1), jnp.float32),          # running max
                pltpu.VMEM((th, tq, 1), jnp.float32),          # running sum
                pltpu.VMEM((th, tq, head_dim), jnp.float32),   # PV accumulator
                pltpu.VMEM((tq, E), jnp.float32),              # output accumulator
            ],
        ),
        compiler_params=pltpu.CompilerParams(
            dimension_semantics=("parallel", "parallel", "arbitrary", "arbitrary"),
            vmem_limit_bytes=min(budget, max(32 << 20, est2)),
        ),
    )(q, k, v, w_out_h, b_out_2d)
    return out


# ---------------------------------------------------------------------------
# Pure-JAX reference mirroring the PyTorch forward (explicit HIGHEST precision
# so f32 comparisons are meaningful on TPU).
# ---------------------------------------------------------------------------
def self_attention_reference(x, w_qkv, b_qkv, w_out, b_out, *, num_heads):
    B, S, E = x.shape
    head_dim = E // num_heads
    hp = jax.lax.Precision.HIGHEST
    qkv = jnp.einsum('bse,fe->bsf', x, w_qkv, precision=hp) + b_qkv
    qkv = qkv.reshape(B, S, 3, num_heads, head_dim)
    qkv = jnp.transpose(qkv, (2, 0, 3, 1, 4))                     # (3, B, H, S, Dh)
    q, k, v = qkv[0], qkv[1], qkv[2]
    scores = jnp.einsum('bhqd,bhkd->bhqk', q, k, precision=hp) / math.sqrt(head_dim)
    weights = jax.nn.softmax(scores, axis=-1)
    attn = jnp.einsum('bhqk,bhkd->bhqd', weights, v, precision=hp)
    attn = jnp.transpose(attn, (0, 2, 1, 3)).reshape(B, S, E)
    return jnp.einsum('bse,fe->bsf', attn, w_out, precision=hp) + b_out


if __name__ == "__main__":
    # Small, module-consistent shapes: batch=2, seq=8, embed_dim=32, num_heads=4.
    B, S, E, H = 2, 8, 32, 4

    key = jax.random.PRNGKey(0)
    kx, kw1, kb1, kw2, kb2 = jax.random.split(key, 5)

    x = jax.random.normal(kx, (B, S, E), dtype=jnp.float32)
    w_qkv = jax.random.normal(kw1, (3 * E, E), dtype=jnp.float32) * (1.0 / math.sqrt(E))
    b_qkv = jax.random.normal(kb1, (3 * E,), dtype=jnp.float32) * 0.01
    w_out = jax.random.normal(kw2, (E, E), dtype=jnp.float32) * (1.0 / math.sqrt(E))
    b_out = jax.random.normal(kb2, (E,), dtype=jnp.float32) * 0.01

    ref = self_attention_reference(x, w_qkv, b_qkv, w_out, b_out, num_heads=H)

    # f32 compute path: exact softmax divide + HIGHEST-precision matmuls both
    # inside the kernel and in the reference -> tight agreement.
    out_f32 = self_attention_pallas(x, w_qkv, b_qkv, w_out, b_out,
                                    num_heads=H, compute_dtype=jnp.float32)
    out_f32 = jax.block_until_ready(out_f32)
    assert out_f32.shape == (B, S, E)
    err32 = float(jnp.max(jnp.abs(out_f32 - ref)))
    assert err32 < 5e-3, f"f32 path mismatch vs reference (max abs err {err32:.3e})"

    # bf16 fast path: compare against a reference fed bf16-rounded activations
    # and weights (isolates algorithmic error from operand rounding).
    _bf = lambda a: jnp.asarray(a, jnp.float32).astype(jnp.bfloat16).astype(jnp.float32)
    ref_bf = self_attention_reference(_bf(x), _bf(w_qkv), b_qkv, _bf(w_out),
                                      b_out, num_heads=H)
    out_bf16 = self_attention_pallas(x, w_qkv, b_qkv, w_out, b_out, num_heads=H)
    out_bf16 = jax.block_until_ready(out_bf16)
    assert out_bf16.shape == (B, S, E)
    assert jnp.allclose(out_bf16.astype(jnp.float32), ref_bf, atol=5e-2, rtol=5e-2), \
        "bf16 path mismatch vs bf16 reference"

    print("KERNEL_OK")
</pallas_src>

<mosaic_0001>
module attributes {stable_mosaic.version = 11 : i64} {
  func.func @_qkv_proj_kernel(%arg0: i32, %arg1: i32, %arg2: i32, %arg3: memref<1x8x32xf32, #tpu.memory_space<vmem>>, %arg4: memref<32x96xf32, #tpu.memory_space<vmem>>, %arg5: memref<1x96xf32, #tpu.memory_space<vmem>>, %arg6: memref<1x8x96xf32, #tpu.memory_space<vmem>>) attributes {dimension_semantics = [#tpu.dimension_semantics<parallel>, #tpu.dimension_semantics<parallel>, #tpu.dimension_semantics<parallel>], iteration_bounds = array<i64: 2, 1, 1>, scalar_prefetch = 0 : i64, scratch_operands = 0 : i64, tpu.core_type = #tpu.core_type<tc>, window_params = [{transform_indices = @transform_0, window_bounds = array<i64: 1, 8, 32>}, {transform_indices = @transform_1, window_bounds = array<i64: 32, 96>}, {transform_indices = @transform_2, window_bounds = array<i64: 1, 96>}, {transform_indices = @transform_3, window_bounds = array<i64: 1, 8, 96>}]} {
    %c0 = arith.constant 0 : index
    %c0_0 = arith.constant 0 : index
    %c0_1 = arith.constant 0 : index
    %0 = vector.load %arg3[%c0, %c0_0, %c0_1] : memref<1x8x32xf32, #tpu.memory_space<vmem>>, vector<1x8x32xf32>
    %1 = vector.shape_cast %0 : vector<1x8x32xf32> to vector<8x32xf32>
    %c0_2 = arith.constant 0 : index
    %c0_3 = arith.constant 0 : index
    %2 = vector.load %arg4[%c0_2, %c0_3] : memref<32x96xf32, #tpu.memory_space<vmem>>, vector<32x96xf32>
    %cst = arith.constant dense<0.000000e+00> : vector<8x96xf32>
    %3 = tpu.matmul %1, %2, %cst {dimension_numbers = #tpu.dot_dimension_numbers<[1], [0], [0], [1], [0, 0, 1, 1], [], []>, precision = #tpu.contract_precision<fp32>} : vector<8x32xf32>, vector<32x96xf32>, vector<8x96xf32> -> vector<8x96xf32>
    %c0_4 = arith.constant 0 : index
    %c0_5 = arith.constant 0 : index
    %4 = vector.load %arg5[%c0_4, %c0_5] : memref<1x96xf32, #tpu.memory_space<vmem>>, vector<1x96xf32>
    %5 = vector.broadcast %4 : vector<1x96xf32> to vector<8x96xf32>
    %6 = arith.addf %3, %5 : vector<8x96xf32>
    %c0_6 = arith.constant 0 : index
    %c0_7 = arith.constant 0 : index
    %c0_8 = arith.constant 0 : index
    %7 = vector.load %arg6[%c0_6, %c0_7, %c0_8] : memref<1x8x96xf32, #tpu.memory_space<vmem>>, vector<1x8x96xf32>
    %8 = vector.shape_cast %7 : vector<1x8x96xf32> to vector<8x96xf32>
    %9 = vector.shape_cast %6 : vector<8x96xf32> to vector<1x8x96xf32>
    tpu.vector_store %arg6[%c0_6, %c0_7, %c0_8], %9 {strides = array<i32>} : memref<1x8x96xf32, #tpu.memory_space<vmem>>, vector<1x8x96xf32>,
    return
  }
  func.func @transform_0(%arg0: i32, %arg1: i32, %arg2: i32) -> (i32, i32, i32) {
    %c0_i32 = arith.constant 0 : i32
    %c0_i32_0 = arith.constant 0 : i32
    return %arg0, %arg1, %c0_i32 : i32, i32, i32
  }
  func.func @transform_1(%arg0: i32, %arg1: i32, %arg2: i32) -> (i32, i32) {
    %c0_i32 = arith.constant 0 : i32
    %c0_i32_0 = arith.constant 0 : i32
    return %c0_i32, %arg2 : i32, i32
  }
  func.func @transform_2(%arg0: i32, %arg1: i32, %arg2: i32) -> (i32, i32) {
    %c0_i32 = arith.constant 0 : i32
    %c0_i32_0 = arith.constant 0 : i32
    return %c0_i32, %arg2 : i32, i32
  }
  func.func @transform_3(%arg0: i32, %arg1: i32, %arg2: i32) -> (i32, i32, i32) {
    %c0_i32 = arith.constant 0 : i32
    return %arg0, %arg1, %arg2 : i32, i32, i32
  }
}

</mosaic_0001>

<bundles_post_ra>
// kernel: tpu_custom_call.1
= control target key start
LH: loop header
LB: loop body
LE: loop exit
PB: predicated region body
PF: predicated region fallthrough
CT: control target
= control target key end

     0   :  { %8 = vsyncpa [#allocation3], 0  ;;  %s1478_s0 = inlined_call_operand.hbm [shape: f32[2,8,32], index: 0, kind: input, shape index: {}]   ;;  %s1479_s1 = inlined_call_operand.hbm [shape: f32[32,96], index: 1, kind: input, shape index: {}]   ;;  %s1480_s2 = inlined_call_operand.vmem [shape: f32[1,96], index: 2, kind: input, shape index: {}]   ;;  %s1481_s3 = inlined_call_operand.hbm [shape: f32[2,8,96], index: 3, kind: output, shape index: {}]  }
   0x1   :  { %10 = vsyncpa [#allocation3 + $0x1], 0 }
   0x2   :  { %11 = vsyncpa [#allocation6], 0 }
   0x3   :  { %12 = vsyncpa [#allocation4], 0 }
   0x4   :  { %14 = vsyncpa [#allocation4 + $0x1], 0  ;;  %s1232_s12 = smov 0   ;;  %s1234_s13 = smov 0  }
   0x5   :  { %s1236_s14 = smov 0   ;;  %s1238_s15 = smov 0  }
   0x6   :  { %s1240_s16 = smov 0   ;;  %s1242_s17 = smov 0  }
   0x7 LB: > { %s875_s18 = sadd.s32 4294967295, %s1203_s17   ;;  %s876_s19 = sadd.s32 4294967294, %s1203_s17   ;;  %s1203_s17 = sphi %s1242_s17, %s20_s17   ;;  %s1199_s16 = sphi %s1240_s16, %s1499_s16   ;;  %s1195_s15 = sphi %s1238_s15, %s1498_s15   ;;  %s1191_s14 = sphi %s1236_s14, %s1497_s14   ;;  %s1187_s13 = sphi %s1234_s13, %s1496_s13   ;;  %s1183_s12 = sphi %s1232_s12, %s1495_s12  }
   0x8   : > { %p61_p0 = scmp.ne.s32.totalorder %s1187_s13, %s1183_s12  ;;  %p1266_p1 = scmp.eq.s32.totalorder %s875_s18, 0 }
   0x9   : > { %p1270_p2 = scmp.eq.s32.totalorder %s875_s18, 1  ;;  %p147_p3 = scmp.eq.s32.totalorder %s876_s19, 1 }
   0xa   : > { %p1276_p4 = por %p1266_p1, %p61_p0  ;;  %p877_p5 = scmp.ge.s32.totalorder %s1203_s17, 1 }
   0xb   : > { %p1281_p6 = por %p147_p3, %p61_p0  ;;  %p154_p7 = scmp.lt.s32.totalorder %s1203_s17, 3 }
   0xc   : > { %s1485_s22 = scalar_select %p1276_p4, 1, 0 }
   0xd   : > { %s1486_s23 = scalar_select %p1281_p6, 1, 0 }
   0xe   : > { %p1286_p8 = pnand %p877_p5, %p154_p7  ;;  %s1205_s25 = smov [#allocation5]  }
   0xf   : > { %s168_s26 = sshll.u32 %s1205_s25, 4  ;;  %s39_s28 = sadd.s32 1, %s1199_s16  ;;  %s169_s26 = int_to_ptr.vmem [resolvable:$true] %s168_s26 }
  0x10   : > { %p996_p9 = pneg %p1286_p8  ;;  %s1076_s29 = scalar_lea.vmem %s169_s26, 512 }
  0x11   : > { %p1077_p13 = scmp.ne.s32.totalorder %s169_s26, %s1076_s29  ;;  %p1084_p5 = scmp.lt.s32.totalorder %s169_s26, %s169_s26 }
  0x12   : > { %p1295_p11 = pnand %p996_p9, %p1266_p1  ;;  %p1085_p7 = scmp.lt.s32.totalorder %s1076_s29, %s1076_s29 }
  0x14   : > { %p1067_p12 = pneg %p1295_p11  ;;  %p1086_p6 = por %p1085_p7, %p1084_p5 }
  0x16   : > { %p1079_p0 = pnand %p1077_p13, %p1067_p12 }
  0x18   : > { %p1080_p3 = pneg %p1079_p0 }
  0x1a   : > { %p1087_p4 = pnand %p1086_p6, %p1080_p3 }
  0x1c   : > { %1090 = shalt.err (!%p1087_p4)
}
  0x1d   : > { %s1206_s30 = smov 128   ;;  %s1207_s4 = smov 8  }
  0x1e   : > { %999 = dma.hbm_to_vmem [thread:$0]  (!%p1295_p11), %s1479_s1, 512, %s169_s26, [#allocation6], %s1206_s30, %s1206_s30, %s1207_s4  }
  0x1f   : > { %p41_p6 = scmp.ge.s32.totalorder %s39_s28, 2  ;;  %s48_s7 = sadd.s32 1, %s1191_s14 }
  0x20   : > { %p55_p4 = scmp.ne.s32.totalorder %s1191_s14, %s1187_s13  ;;  %p56_p9 = scmp.eq.s32.totalorder %s1203_s17, 0 }
  0x21   : > { %s1501_s28 = smov (%p41_p6, %s39_s28), 0  ;;  %p1009_p0 = scmp.lt.s32.totalorder %s1203_s17, 2 }
  0x22   : > { %p1313_p12 = por %p56_p9, %p55_p4  ;;  %p1319_p13 = por %p1270_p2, %p55_p4 }
  0x23   : > { %s43_s10 = ssub.s32 %s1199_s16, %s1501_s28  ;;  %s188_s11 = sand.u32 1, %s1191_s14  }
  0x24   : > { %p46_p11 = scmp.eq.s32.totalorder %s43_s10, 0  ;;  %s881_s18 = sshll.u32 %s188_s11, 3 }
  0x25   : > { %s882_s25 = sshll.u32 %s1199_s16, 7  ;;  %s192_s30 = scalar_lea.vmem [#allocation2], %s881_s18 }
  0x26   : > { %s1328_s19 = scalar_select %p46_p11, %s1191_s14, %s48_s7  }
  0x27   : > { %s198_s29 = scalar_lea.hbm %s1478_s0, %s882_s25  ;;  %s200_s4 = sshll.u32 %s192_s30, 4  ;;  %s201_s4 = int_to_ptr.vmem [resolvable:$true] %s200_s4 }
  0x28   : > { %p1336_p2 = pnand %p1009_p0, %p1313_p12  ;;  %s189_s5 = scalar_lea.sflag [#allocation3], %s188_s11 }
  0x29   : > { %s1104_s6 = scalar_lea.vmem %s201_s4, 128  ;;  %s1208_s7 = smov [#allocation2]  }
  0x2a   : > { %p1093_p3 = pneg %p1336_p2  ;;  %p1105_p5 = scmp.ne.s32.totalorder %s201_s4, %s1104_s6 }
  0x2b   : > { %s1109_s10 = sshll.u32 %s1208_s7, 4  ;;  %s1110_s10 = int_to_ptr.vmem [resolvable:$false] %s1109_s10 }
  0x2c   : > { %p1107_p7 = pnand %p1105_p5, %p1093_p3  ;;  %s1111_s25 = scalar_lea.vmem %s1110_s10, 256 }
  0x2d   : > { %p1112_p4 = scmp.lt.s32.totalorder %s201_s4, %s1110_s10  ;;  %p1113_p9 = scmp.lt.s32.totalorder %s1111_s25, %s1104_s6 }
  0x2e   : > { %p1108_p6 = pneg %p1107_p7 }
  0x2f   : > { %p1114_p11 = por %p1113_p9, %p1112_p4 }
  0x31   : > { %p1115_p10 = pnand %p1114_p11, %p1108_p6 }
  0x33   : > { %1118 = shalt.err (!%p1115_p10)
}
  0x34   : > { %1003 = dma.hbm_to_vmem [thread:$0]  (!%p1336_p2), %s198_s29, 128, %s201_s4, %s189_s5  }
  0x35   : > { %209 = sbr.rel (%p1286_p8) target bundleno = 307 (0x133), region = 32  ;;  %s1347_s8 = sand.u32 (!%p1286_p8), 1, %s1187_s13  }
  0x36   : > { %s884_s11 = sshll.u32 (!%p1286_p8), %s1347_s8, 3  ;;  %s212_s18 = scalar_lea.sflag (!%p1286_p8), [#allocation3], %s1347_s8 }
  0x37   : > { %s215_s26 = scalar_lea.vmem (!%p1286_p8), [#allocation2], %s884_s11  ;;  %p1492_p12 = scmp.ne.s32.totalorder (!%p1286_p8), %s1485_s22, 0 }
  0x3a   : > { %1170 = dma.done.wait (%p1492_p12), %s212_s18, 128  }
  0x3b   : > { %1172 = vsyncadd (%p1492_p12), %s212_s18, 4294967168 }
  0x3c   : > { %1174 = dma.done.wait (%p1266_p1), [#allocation6], 512  }
  0x3d   : > { %1176 = vsyncadd (%p1266_p1), [#allocation6], 4294966784  ;;  %v1209_v0 = vmov 0.0   ;;  %vm1210_vm0 = vmmov 0   ;;  %vm260_vm1 = vcmask 261120   ;;  %v252_v1 = vld [vmem:[#allocation5 + $0x18] sm:$0xff] }
  0x3e   : > { %922 = vmatprep.subr.mxu0 %v1209_v0  ;;  %933 = vmatprep.subr.mxu1 %v1209_v0  ;;  %v251_v2 = vld [vmem:[#allocation5 + $0x10] sm:$0xff]  ;;  %v250_v3 = vld [vmem:[#allocation5 + $0x8] sm:$0xff]  ;;  %v1367_v4 = vand.u32 4294901760, %v252_v1  ;;  %v249_v7 = vld [vmem:[#allocation5] sm:$0xff]  ;;  %s889_s24 = sshll.u32 %s1195_s15, 7  ;;  %s244_s27 = scalar_lea.vmem [#allocation7], %s884_s11 }
  0x3f   : > { %930 = vmatprep.mubr.msk.f32.mxu0 %vm1210_vm0, %v1209_v0  ;;  %941 = vmatprep.mubr.msk.f32.mxu1 %vm1210_vm0, %v1209_v0  ;;  %v1369_v5 = vand.u32 4294901760, %v251_v2  ;;  %v1371_v6 = vand.u32 4294901760, %v250_v3  ;;  %v248_v8 = vld [vmem:[%s215_s26] sm:$0xff]  ;;  %v1373_v9 = vand.u32 4294901760, %v249_v7  ;;  %s767_s29 = sshll.u32 %s244_s27, 4  ;;  %vm749_vm2 = vcmask 785408   ;;  %s1436_s21 = scalar_lea.hbm %s1481_s3, %s889_s24  ;;  %s768_s29 = int_to_ptr.vmem [resolvable:$true] %s767_s29 }
  0x40   : > { %v262_v10 = vsel %vm260_vm1, %v248_v8, 0  ;;  %923 = vmatpush3.msra.mxu0 %v1367_v4  ;;  %v369_v11 = vsub.f32 %v252_v1, %v1367_v4  ;;  %v887_v35 = vld [vmem:[%s1480_s2] ss:$0 sm:$0xff]  ;;  %s752_s5 = scalar_lea.sflag [#allocation4], %s1347_s8  ;;  %s1119_s6 = scalar_lea.vmem %s768_s29, 128 }
  0x41   : > { %v1377_v12 = vand.u32 4294901760, %v262_v10  ;;  %v376_v13 = vsub.f32 %v251_v2, %v1369_v5  ;;  %v383_v14 = vsub.f32 %v250_v3, %v1371_v6  ;;  %924 = vmatprep.subr.mxu0 %v1209_v0  ;;  %v390_v15 = vsub.f32 %v249_v7, %v1373_v9  ;;  %p1120_p1 = scmp.ne.s32.totalorder %s768_s29, %s1119_s6  ;;  %s1211_s15 = smov [#allocation7]  }
  0x42   : > { %925 = vmatpush3.msra.mxu0 %v1369_v5  ;;  %v370_v16 = vand.u32 4294901760, %v369_v11  ;;  %s1123_s7 = sshll.u32 %s1211_s15, 4  ;;  %s1124_s7 = int_to_ptr.vmem [resolvable:$false] %s1123_s7 }
  0x43   : > { %v334_v17 = vsub.f32 %v262_v10, %v1377_v12  ;;  %v377_v18 = vand.u32 4294901760, %v376_v13  ;;  %v384_v19 = vand.u32 4294901760, %v383_v14  ;;  %926 = vmatprep.subr.mxu0 %v1209_v0  ;;  %v391_v20 = vand.u32 4294901760, %v390_v15  ;;  %p1121_p8 = pnand %p1120_p1, %p1319_p13  ;;  %s1125_s10 = scalar_lea.vmem %s1124_s7, 256 }
  0x44   : > { %927 = vmatpush3.msra.mxu0 %v1371_v6  ;;  %v371_v21 = vsub.f32 %v369_v11, %v370_v16  ;;  %p1126_p0 = scmp.lt.s32.totalorder %s768_s29, %s1124_s7  ;;  %p1127_p2 = scmp.lt.s32.totalorder %s1125_s10, %s1119_s6 }
  0x45   : > { %v335_v22 = vand.u32 4294901760, %v334_v17  ;;  %v378_v23 = vsub.f32 %v376_v13, %v377_v18  ;;  %v385_v24 = vsub.f32 %v383_v14, %v384_v19  ;;  %928 = vmatprep.subr.mxu0 %v1209_v0  ;;  %v392_v28 = vsub.f32 %v390_v15, %v391_v20  ;;  %p1122_p10 = pneg %p1121_p8 }
  0x46   : > { %929 = vmatpush3.msra.mxu0 %v1373_v9  ;;  %v372_v25 = vand.u32 4294901760, %v371_v21  ;;  %p1128_p3 = por %p1127_p2, %p1126_p0 }
  0x47   : > { %v336_v26 = vsub.f32 %v334_v17, %v335_v22  ;;  %v379_v27 = vand.u32 4294901760, %v378_v23  ;;  %944 = vmatprep.subr.mxu0 %v1209_v0  ;;  %v386_v30 = vand.u32 4294901760, %v385_v24  ;;  %v393_v31 = vand.u32 4294901760, %v392_v28 }
  0x48   : > { %934 = vmatpush3.msra.mxu1 %v372_v25  ;;  %p1129_p5 = pnand %p1128_p3, %p1122_p10 }
  0x49   : > { %v337_v29 = vand.u32 4294901760, %v336_v26  ;;  %935 = vmatprep.subr.mxu1 %v1209_v0 }
  0x4a   : > { %936 = vmatpush3.msra.mxu1 %v379_v27 }
  0x4b   : > { %931 = vmatmul.mubr.f32.vlgmr.msra.gmra.mxu0 %v337_v29  ;;  %937 = vmatprep.subr.mxu1 %v1209_v0 }
  0x4c   : > { %945 = vmatpush3.msra.mxu0 %v369_v11  ;;  %938 = vmatpush3.msra.mxu1 %v386_v30 }
  0x4d   : > { %946 = vmatprep.subr.mxu0 %v1209_v0  ;;  %939 = vmatprep.subr.mxu1 %v1209_v0 }
  0x4e   : > { %947 = vmatpush3.msra.mxu0 %v376_v13  ;;  %940 = vmatpush3.msra.mxu1 %v393_v31 }
  0x4f   : > { %948 = vmatprep.subr.mxu0 %v1209_v0  ;;  %942 = vmatmul.mubr.f32.vlgmr.msra.gmra.mxu1 %v1377_v12 }
  0x50   : > { %949 = vmatpush3.msra.mxu0 %v383_v14  ;;  %955 = vmatprep.subr.mxu1 %v1209_v0 }
  0x51   : > { %950 = vmatprep.subr.mxu0 %v1209_v0  ;;  %956 = vmatpush3.msra.mxu1 %v1367_v4 }
  0x52   : > { %951 = vmatpush3.msra.mxu0 %v390_v15  ;;  %952 = vmatprep.mubr.msk.f32.mxu0 %vm1210_vm0, %v1209_v0 }
  0x53   : > { %957 = vmatprep.subr.mxu1 %v1209_v0  ;;  %966 = vmatprep.subr.mxu0 %v1209_v0 }
  0x54   : > { %953 = vmatmul.mubr.f32.vlgmr.msra.gmra.mxu0 %v334_v17  ;;  %958 = vmatpush3.msra.mxu1 %v1369_v5 }
  0x55   : > { %967 = vmatpush3.msra.mxu0 %v370_v16  ;;  %959 = vmatprep.subr.mxu1 %v1209_v0 }
  0x56   : > { %968 = vmatprep.subr.mxu0 %v1209_v0  ;;  %960 = vmatpush3.msra.mxu1 %v1371_v6 }
  0x57   : > { %969 = vmatpush3.msra.mxu0 %v377_v18  ;;  %961 = vmatprep.subr.mxu1 %v1209_v0 }
  0x58   : > { %970 = vmatprep.subr.mxu0 %v1209_v0  ;;  %962 = vmatpush3.msra.mxu1 %v1373_v9 }
  0x59   : > { %963 = vmatprep.mubr.msk.f32.mxu1 %vm1210_vm0, %v1209_v0  ;;  %971 = vmatpush3.msra.mxu0 %v384_v19 }
  0x5a   : > { %964 = vmatmul.mubr.f32.vlgmr.msra.gmra.mxu1 %v335_v22  ;;  %972 = vmatprep.subr.mxu0 %v1209_v0 }
  0x5b   : > { %977 = vmatprep.subr.mxu1 %v1209_v0  ;;  %973 = vmatpush3.msra.mxu0 %v391_v20 }
  0x5c   : > { %974 = vmatprep.mubr.msk.f32.mxu0 %vm1210_vm0, %v1209_v0  ;;  %978 = vmatpush3.msra.mxu1 %v1367_v4 }
  0x5d   : > { %975 = vmatmul.mubr.f32.vlgmr.msra.gmra.mxu0 %v1377_v12  ;;  %979 = vmatprep.subr.mxu1 %v1209_v0 }
  0x5e   : > { %985 = vmatprep.mubr.msk.f32.mxu1 %vm1210_vm0, %v1209_v0  ;;  %980 = vmatpush3.msra.mxu1 %v1369_v5 }
  0x5f   : > { %981 = vmatprep.subr.mxu1 %v1209_v0 }
  0x60   : > { %982 = vmatpush3.msra.mxu1 %v1371_v6 }
  0x61   : > { %983 = vmatprep.subr.mxu1 %v1209_v0 }
  0x62   : > { %984 = vmatpush3.msra.mxu1 %v1373_v9 }
  0x63   : > { %986 = vmatmul.mubr.f32.vlgmr.msra.gmra.mxu1 %v1377_v12 }
 0x10b   : > { %v339_v32 = vpop.f32.mrf.mxu0 }
 0x10c   : > { %v340_v38 = vadd.f32 %v887_v35, %v339_v32 }
 0x10d   : > { %v932_v33 = vpop.f32.mrf.mxu0 }
 0x10f   : > { %v430_v34 = vpop.f32.mrf.mxu1 }
 0x110   : > { %v431_v40 = vadd.f32 %v430_v34, %v340_v38 }
 0x111   : > { %v943_v36 = vpop.f32.mrf.mxu1 }
 0x114   : > { %v510_v37 = vpop.f32.mrf.mxu0 }
 0x115   : > { %v511_v43 = vadd.f32 %v510_v37, %v431_v40 }
 0x116   : > { %v954_v39 = vpop.f32.mrf.mxu0 }
 0x11a   : > { %v587_v41 = vpop.f32.mrf.mxu1 }
 0x11b   : > { %v588_v45 = vadd.f32 %v587_v41, %v511_v43 }
 0x11c   : > { %v965_v42 = vpop.f32.mrf.mxu1 }
 0x11d   : > { %v670_v44 = vpop.f32.mrf.mxu0 }
 0x11e   : > { %v671_v47 = vadd.f32 %v670_v44, %v588_v45 }
 0x11f   : > { %v976_v46 = vpop.f32.mrf.mxu0 }
 0x123   : > { %v745_v48 = vpop.f32.mrf.mxu1 }
 0x124   : > { %v746_v49 = vadd.f32 %v745_v48, %v671_v47 }
 0x125   : > { %v987_v50 = vpop.f32.mrf.mxu1 }
 0x126   : > { %750 = vst.msk [vmem:[%s244_s27] sm:$0xff] %vm749_vm2, %v746_v49 }
 0x127   : > { %1132 = shalt.err (!%p1129_p5)
}
 0x128   : > { %s1133_s25 = scalar_lea.hbm %s1436_s21, 128  ;;  %s1137_s18 = scalar_lea.hbm %s1481_s3, 256 }
 0x129   : > { %p1134_p7 = scmp.ne.s32.totalorder %s1436_s21, %s1133_s25  ;;  %p1138_p9 = scmp.lt.s32.totalorder %s1436_s21, %s1481_s3 }
 0x12a   : > { %p1139_p11 = scmp.lt.s32.totalorder %s1137_s18, %s1133_s25 }
 0x12b   : > { %p1135_p6 = pnand %p1134_p7, %p1319_p13 }
 0x12c   : > { %p1140_p12 = por %p1139_p11, %p1138_p9 }
 0x12d   : > { %p1136_p4 = pneg %p1135_p6 }
 0x12f   : > { %p1141_p1 = pnand %p1140_p12, %p1136_p4 }
 0x131   : > { %1144 = shalt.err (!%p1141_p1)
}
 0x132   : > { %994 = dma.vmem_to_hbm [thread:$0]  (%p1319_p13), %s768_s29, 128, %s1436_s21, %s752_s5  }
 0x133 PF: > { %s779_s22 = sand.u32 1, %s1183_s12   ;;  %p1493_p8 = scmp.ne.s32.totalorder %s1486_s23, 0 }
 0x134   : > { %p1494_p10 = scmp.ge.s32.totalorder %s1203_s17, 2  ;;  %s780_s24 = scalar_lea.sflag [#allocation4], %s779_s22 }
 0x136   : > { %p1005_p0 = pnand %p1494_p10, %p1493_p8 }
 0x138   : > { %p1006_p2 = pneg %p1005_p0 }
 0x13a   : > { %1178 = dma.done.wait (%p1006_p2), %s780_s24, 128  }
 0x13b   : > { %1180 = vsyncadd (%p1006_p2), %s780_s24, 4294967168  ;;  %s20_s17 = sadd.s32 1, %s1203_s17   ;;  %s1495_s12 = smov %s1187_s13 }
 0x13c   : > { %p17_p3 = scmp.ge.s32.totalorder %s20_s17, 4   ;;  %s1496_s13 = smov %s1191_s14 }
 0x13d   : > { %s1497_s14 = smov %s1328_s19  ;;  %s1498_s15 = smov %s1199_s16 }
 0x13e   : > { %s1499_s16 = smov %s1501_s28  ;;  %19 = sbr.rel (!%p17_p3) target bundleno = 7 (0x7), region = 85 }
 0x143   :  { %785 = vsyncpa [#allocation3], 1 }
 0x144   :  { %787 = vsyncpa [#allocation3 + $0x1], 1 }
 0x145   :  { %788 = vsyncpa [#allocation6], 1 }
 0x146   :  { %789 = vsyncpa [#allocation4], 1 }
 0x147   :  { %791 = vsyncpa [#allocation4 + $0x1], 1 }

</bundles_post_ra>
